<compile_context>
chip_gen: v5e
topology: v5e:2x2
jax: 0.10.0
libtpu: 0.0.40
codegen_flags: <defaults>
</compile_context>

<pallas_src>
import functools
import math

import jax
import jax.numpy as jnp
from jax.experimental import pallas as pl
from jax.experimental.pallas import tpu as pltpu

# Per-group parameter residency budget.  Chosen so params + tile buffers +
# headroom stay well inside v7x's 64 MiB VMEM per TensorCore (v5e/v6e have
# 128 MiB and are never the binding constraint here).
_GROUP_PARAM_BUDGET = 40 << 20


def _round_up(n, m):
    return (n + m - 1) // m * m


def _fused_mlp_kernel(*refs, n_layers, activations):
    """refs = (x_ref, w0, b0, w1, b1, ..., w_{L-1}, b_{L-1}, o_ref).

    x_ref: (tm, F_pad) bf16, w_i: (in_pad, out_pad) bf16, b_i: (1, out_pad) f32.
    The entire layer stack is evaluated on one VMEM-resident batch tile.
    """
    x_ref = refs[0]
    o_ref = refs[1 + 2 * n_layers]

    h = x_ref[...]  # bf16 batch tile
    for li in range(n_layers):
        w_ref = refs[1 + 2 * li]
        b_ref = refs[2 + 2 * li]
        lhs = h if h.dtype == w_ref.dtype else h.astype(w_ref.dtype)
        # bf16 on the MXU, f32 accumulation.
        y = jnp.dot(lhs, w_ref[...], preferred_element_type=jnp.float32)
        y = y + b_ref[...]  # (1, out_pad) broadcasts over rows; f32 epilogue
        act = activations[li]
        if act == "relu":
            y = jnp.maximum(y, 0.0)
        elif act == "lrelu":
            y = jnp.where(y >= 0.0, y, 0.2 * y)   # LeakyReLU(0.2) per the spec
        elif act == "tanh":
            y = jnp.tanh(y)
        elif act == "none":
            pass
        else:
            raise ValueError(f"unsupported activation: {act}")
        if li + 1 < n_layers:
            # Keep inter-layer activations in bf16: halves live VMEM/vreg
            # footprint; the next dot's MXU input is unchanged numerically.
            h = y.astype(refs[1 + 2 * (li + 1)].dtype)
        else:
            h = y  # final layer stays f32 -> exact f32 tanh output
    o_ref[...] = h.astype(o_ref.dtype)


def _pick_batch_tile(B, batch_tile):
    """Batch-tile size: full-dim block for tiny batches, otherwise a multiple
    of 8, split so the 'parallel' grid axis has >= 2 tiles (v7x dual-TC)."""
    if B <= 8:
        return B                       # block dim == full array dim -> allowed
    b8 = _round_up(B, 8)
    tm = min(_round_up(batch_tile, 8), b8)
    if B >= 16 and pl.cdiv(B, tm) == 1:
        tm = _round_up((b8 + 1) // 2, 8)
    return tm


def fused_mlp_forward(x2d, weights, biases, activations, *,
                      batch_tile=512, out_dtype=jnp.float32):
    """Run one fused layer group.

    x2d:     (B, F) float/bfloat array (unpadded or already lane-padded).
    weights: list of (in_pad, out_pad) bf16 arrays (zero-padded to 128 mult).
    biases:  list of (1, out_pad) float32 arrays (zero-padded).
    Returns (B, out_pad_last) out_dtype.
    """
    B, F = x2d.shape
    F_pad = weights[0].shape[0]
    out_pad = weights[-1].shape[1]
    n_layers = len(weights)

    # bf16 input halves the per-tile HBM->VMEM DMA; the MXU input is bf16
    # either way, so numerics are unchanged.
    x_in = x2d.astype(jnp.bfloat16)
    if F != F_pad:
        # Only pad the lane dim when needed (zero cols keep the math exact:
        # act(0) == 0 for relu/lrelu/tanh and bias padding is 0).
        x_in = jnp.pad(x_in, ((0, 0), (0, F_pad - F)))

    tm = _pick_batch_tile(B, batch_tile)
    grid = (pl.cdiv(B, tm),)

    # VMEM budget: resident params + x/out tile buffers + live activation.
    param_bytes = sum(int(a.size) * a.dtype.itemsize for a in weights) \
        + sum(int(a.size) * a.dtype.itemsize for a in biases)
    max_pad = max(w.shape[1] for w in weights)
    out_itemsize = jnp.dtype(out_dtype).itemsize
    tile_bytes = (2 * tm * F_pad * 2                 # bf16 x tile, double-buffered
                  + 2 * tm * out_pad * out_itemsize  # out tile, double-buffered
                  + 2 * tm * max_pad * 4)            # live f32 acc + bf16 act headroom
    vmem_limit = int(min(max(param_bytes + tile_bytes + (4 << 20), 32 << 20),
                         100 << 20))

    flops = 2 * B * sum(w.shape[0] * w.shape[1] for w in weights)
    transcendentals = B * sum(w.shape[1] for w, a in zip(weights, activations)
                              if a == "tanh")
    bytes_accessed = (int(x_in.size) * x_in.dtype.itemsize + param_bytes
                      + B * out_pad * out_itemsize)
    cost = pl.CostEstimate(flops=flops, transcendentals=transcendentals,
                           bytes_accessed=bytes_accessed)

    operands = [x_in]
    for w, b in zip(weights, biases):
        operands.append(w)
        operands.append(b)

    kernel = functools.partial(_fused_mlp_kernel, n_layers=n_layers,
                               activations=tuple(activations))

    def _call(single_buffer_params):
        in_specs = [pl.BlockSpec((tm, F_pad), lambda i: (i, 0))]
        for w, b in zip(weights, biases):
            if single_buffer_params:
                # Constant index_map -> params stay VMEM-resident; a single
                # buffer is enough (default double-buffering wastes VMEM).
                in_specs.append(pl.BlockSpec(w.shape, lambda i: (0, 0),
                                             pipeline_mode=pl.Buffered(1)))
                in_specs.append(pl.BlockSpec(b.shape, lambda i: (0, 0),
                                             pipeline_mode=pl.Buffered(1)))
            else:
                in_specs.append(pl.BlockSpec(w.shape, lambda i: (0, 0)))
                in_specs.append(pl.BlockSpec(b.shape, lambda i: (0, 0)))
        return pl.pallas_call(
            kernel,
            out_shape=jax.ShapeDtypeStruct((B, out_pad), out_dtype),
            grid=grid,
            in_specs=in_specs,
            out_specs=pl.BlockSpec((tm, out_pad), lambda i: (i, 0)),
            compiler_params=pltpu.CompilerParams(
                dimension_semantics=("parallel",),   # v7x shards batch tiles
                vmem_limit_bytes=vmem_limit),
            cost_estimate=cost,
        )(*operands)

    try:
        return _call(True)
    except Exception:
        # pipeline_mode=pl.Buffered(1) not supported by this jax/Mosaic build;
        # fall back to default double-buffered params (correctness identical).
        return _call(False)


def _split_layer_groups(weights, biases, activations, budget_bytes):
    """Group consecutive layers so each group's params fit the VMEM budget
    (v7x has only 64 MiB VMEM per TensorCore)."""
    groups, cur_w, cur_b, cur_a, cur_bytes = [], [], [], [], 0
    for w, b, a in zip(weights, biases, activations):
        nbytes = int(w.size) * w.dtype.itemsize + int(b.size) * b.dtype.itemsize
        if cur_w and cur_bytes + nbytes > budget_bytes:
            groups.append((cur_w, cur_b, cur_a))
            cur_w, cur_b, cur_a, cur_bytes = [], [], [], 0
        cur_w.append(w)
        cur_b.append(b)
        cur_a.append(a)
        cur_bytes += nbytes
    if cur_w:
        groups.append((cur_w, cur_b, cur_a))
    # TODO(synk): a single layer larger than the budget would still need its
    # output (N) dim tiled; not implemented (not reachable at sane MLP sizes).
    return groups


class MLP:
    """JAX/Pallas port of VanillaAE MLP (norm='none', activ in relu/lrelu/tanh/none)."""

    def __init__(self, input_dim, output_dim, dim, n_blk, key,
                 norm="none", activ="relu", batch_tile=512):
        assert norm == "none", "only norm='none' (default) is implemented"
        # TODO(synk): norm='bn'/'in'/'ln'/'sn' LinearBlock variants and
        # 'prelu'/'selu' activations are not implemented.
        self.input_dim = input_dim
        self.output_dim = output_dim
        self.batch_tile = batch_tile

        layer_dims = [(input_dim, dim, activ)]
        for _ in range(n_blk - 2):
            layer_dims.append((dim, dim, activ))
        layer_dims.append((dim, output_dim, "tanh"))

        self.weights = []      # (in_pad, out_pad) bf16, zero-padded
        self.biases = []       # (1, out_pad) f32, zero-padded
        self.activations = []

        keys = jax.random.split(key, 2 * len(layer_dims))
        for i, (din, dout, act) in enumerate(layer_dims):
            # deterministic init (nn.Linear-style +-1/sqrt(fan_in) bounds)
            bound = 1.0 / float(din) ** 0.5
            w = jax.random.uniform(keys[2 * i], (din, dout),
                                   minval=-bound, maxval=bound,
                                   dtype=jnp.float32)
            b = jax.random.uniform(keys[2 * i + 1], (dout,),
                                   minval=-bound, maxval=bound,
                                   dtype=jnp.float32)
            din_p = _round_up(din, 128)
            dout_p = _round_up(dout, 128)
            # Zero padding keeps the math exact: padded rows/cols contribute 0
            # and relu(0)=lrelu(0)=tanh(0)=0, so padded lanes stay 0 throughout.
            w_p = jnp.zeros((din_p, dout_p), jnp.float32).at[:din, :dout].set(w)
            b_p = jnp.zeros((1, dout_p), jnp.float32).at[0, :dout].set(b)
            # NOTE: weights are stored bf16 (MXU fast path) — intentional
            # ~1e-2-level deviation from an f32 PyTorch MLP.
            self.weights.append(w_p.astype(jnp.bfloat16))
            self.biases.append(b_p)                         # bias add stays f32
            self.activations.append(act)

        # VMEM-fit layer grouping (only >1 group for very large dim/n_blk).
        self._groups = _split_layer_groups(self.weights, self.biases,
                                           self.activations,
                                           _GROUP_PARAM_BUDGET)

    def __call__(self, x):
        sz = x.shape
        B = sz[0]
        flat = int(math.prod(sz[1:]))
        assert flat == self.input_dim, (
            f"x flattens to {flat} features, expected input_dim={self.input_dim}")
        assert self.output_dim == flat, (
            "the final .view(sz) requires output_dim == prod(x.shape[1:])")
        h = x.reshape(B, -1).astype(jnp.float32)   # == torch x.view(x.size(0), -1)
        for ws, bs, acts in self._groups:
            h = fused_mlp_forward(h, ws, bs, acts, batch_tile=self.batch_tile)
        out = h[:, :self.output_dim]
        return out.reshape(sz)

    def reference(self, x):
        """Pure-JAX reference with identical numerics (bf16 dot, f32 epilogue)."""
        sz = x.shape
        h = x.reshape(sz[0], -1).astype(jnp.float32)
        F = h.shape[1]
        h = jnp.zeros((h.shape[0], self.weights[0].shape[0]),
                      jnp.float32).at[:, :F].set(h)
        for w, b, act in zip(self.weights, self.biases, self.activations):
            y = jnp.dot(h.astype(jnp.bfloat16), w,
                        preferred_element_type=jnp.float32) + b
            if act == "relu":
                y = jnp.maximum(y, 0.0)
            elif act == "lrelu":
                y = jnp.where(y >= 0.0, y, 0.2 * y)
            elif act == "tanh":
                y = jnp.tanh(y)
            h = y
        return h[:, :self.output_dim].reshape(sz)


if __name__ == "__main__":
    key = jax.random.PRNGKey(0)
    k_x, k_p = jax.random.split(key)

    # small shapes: batch=2, x flattens to input_dim = 4*8 = 32
    x = jax.random.normal(k_x, (2, 4, 8), dtype=jnp.float32)
    input_dim = 4 * 8
    output_dim = input_dim  # required so the final .view(sz) is valid
    hidden = 64
    n_blk = 3

    mlp = MLP(input_dim, output_dim, hidden, n_blk, k_p,
              norm="none", activ="relu")

    y = jax.block_until_ready(mlp(x))
    assert y.shape == x.shape
    assert bool(jnp.all(jnp.isfinite(y)))
    assert bool(jnp.all(jnp.abs(y) <= 1.0 + 1e-6))  # tanh-bounded output

    y_ref = jax.block_until_ready(mlp.reference(x))
    assert bool(jnp.allclose(y, y_ref, atol=1e-2, rtol=1e-2))

    print("KERNEL_OK")
</pallas_src>

<mosaic_0001>
module attributes {stable_mosaic.version = 11 : i64} {
  func.func @_fused_mlp_kernel(%arg0: i32, %arg1: memref<2x128xbf16, #tpu.memory_space<vmem>>, %arg2: memref<128x128xbf16, #tpu.memory_space<vmem>>, %arg3: memref<1x128xf32, #tpu.memory_space<vmem>>, %arg4: memref<128x128xbf16, #tpu.memory_space<vmem>>, %arg5: memref<1x128xf32, #tpu.memory_space<vmem>>, %arg6: memref<128x128xbf16, #tpu.memory_space<vmem>>, %arg7: memref<1x128xf32, #tpu.memory_space<vmem>>, %arg8: memref<2x128xf32, #tpu.memory_space<vmem>>) attributes {dimension_semantics = [#tpu.dimension_semantics<parallel>], iteration_bounds = array<i64: 1>, scalar_prefetch = 0 : i64, scratch_operands = 0 : i64, tpu.core_type = #tpu.core_type<tc>, window_params = [{transform_indices = @transform_0, window_bounds = array<i64: 2, 128>}, {pipeline_mode = #tpu.pipeline_mode<synchronous>, transform_indices = @transform_1, window_bounds = array<i64: 128, 128>}, {pipeline_mode = #tpu.pipeline_mode<synchronous>, transform_indices = @transform_2, window_bounds = array<i64: 1, 128>}, {pipeline_mode = #tpu.pipeline_mode<synchronous>, transform_indices = @transform_3, window_bounds = array<i64: 128, 128>}, {pipeline_mode = #tpu.pipeline_mode<synchronous>, transform_indices = @transform_4, window_bounds = array<i64: 1, 128>}, {pipeline_mode = #tpu.pipeline_mode<synchronous>, transform_indices = @transform_5, window_bounds = array<i64: 128, 128>}, {pipeline_mode = #tpu.pipeline_mode<synchronous>, transform_indices = @transform_6, window_bounds = array<i64: 1, 128>}, {transform_indices = @transform_7, window_bounds = array<i64: 2, 128>}]} {
    %c0 = arith.constant 0 : index
    %c0_0 = arith.constant 0 : index
    %0 = vector.load %arg1[%c0, %c0_0] : memref<2x128xbf16, #tpu.memory_space<vmem>>, vector<2x128xbf16>
    %c0_1 = arith.constant 0 : index
    %c0_2 = arith.constant 0 : index
    %1 = vector.load %arg2[%c0_1, %c0_2] : memref<128x128xbf16, #tpu.memory_space<vmem>>, vector<128x128xbf16>
    %cst = arith.constant dense<0.000000e+00> : vector<2x128xf32>
    %2 = tpu.matmul %0, %1, %cst {dimension_numbers = #tpu.dot_dimension_numbers<[1], [0], [0], [1], [0, 0, 1, 1], [], []>} : vector<2x128xbf16>, vector<128x128xbf16>, vector<2x128xf32> -> vector<2x128xf32>
    %c0_3 = arith.constant 0 : index
    %c0_4 = arith.constant 0 : index
    %3 = vector.load %arg3[%c0_3, %c0_4] : memref<1x128xf32, #tpu.memory_space<vmem>>, vector<1x128xf32>
    %4 = vector.broadcast %3 : vector<1x128xf32> to vector<2x128xf32>
    %5 = arith.addf %2, %4 : vector<2x128xf32>
    %cst_5 = arith.constant 0.000000e+00 : f32
    %6 = vector.broadcast %cst_5 : f32 to vector<2x128xf32>
    %7 = arith.maximumf %5, %6 : vector<2x128xf32>
    %8 = arith.truncf %7 : vector<2x128xf32> to vector<2x128xbf16>
    %c0_6 = arith.constant 0 : index
    %c0_7 = arith.constant 0 : index
    %9 = vector.load %arg4[%c0_6, %c0_7] : memref<128x128xbf16, #tpu.memory_space<vmem>>, vector<128x128xbf16>
    %cst_8 = arith.constant dense<0.000000e+00> : vector<2x128xf32>
    %10 = tpu.matmul %8, %9, %cst_8 {dimension_numbers = #tpu.dot_dimension_numbers<[1], [0], [0], [1], [0, 0, 1, 1], [], []>} : vector<2x128xbf16>, vector<128x128xbf16>, vector<2x128xf32> -> vector<2x128xf32>
    %c0_9 = arith.constant 0 : index
    %c0_10 = arith.constant 0 : index
    %11 = vector.load %arg5[%c0_9, %c0_10] : memref<1x128xf32, #tpu.memory_space<vmem>>, vector<1x128xf32>
    %12 = vector.broadcast %11 : vector<1x128xf32> to vector<2x128xf32>
    %13 = arith.addf %10, %12 : vector<2x128xf32>
    %cst_11 = arith.constant 0.000000e+00 : f32
    %14 = vector.broadcast %cst_11 : f32 to vector<2x128xf32>
    %15 = arith.maximumf %13, %14 : vector<2x128xf32>
    %16 = arith.truncf %15 : vector<2x128xf32> to vector<2x128xbf16>
    %c0_12 = arith.constant 0 : index
    %c0_13 = arith.constant 0 : index
    %17 = vector.load %arg6[%c0_12, %c0_13] : memref<128x128xbf16, #tpu.memory_space<vmem>>, vector<128x128xbf16>
    %cst_14 = arith.constant dense<0.000000e+00> : vector<2x128xf32>
    %18 = tpu.matmul %16, %17, %cst_14 {dimension_numbers = #tpu.dot_dimension_numbers<[1], [0], [0], [1], [0, 0, 1, 1], [], []>} : vector<2x128xbf16>, vector<128x128xbf16>, vector<2x128xf32> -> vector<2x128xf32>
    %c0_15 = arith.constant 0 : index
    %c0_16 = arith.constant 0 : index
    %19 = vector.load %arg7[%c0_15, %c0_16] : memref<1x128xf32, #tpu.memory_space<vmem>>, vector<1x128xf32>
    %20 = vector.broadcast %19 : vector<1x128xf32> to vector<2x128xf32>
    %21 = arith.addf %18, %20 : vector<2x128xf32>
    %22 = math.tanh %21 : vector<2x128xf32>
    %c0_17 = arith.constant 0 : index
    %c0_18 = arith.constant 0 : index
    %23 = vector.load %arg8[%c0_17, %c0_18] : memref<2x128xf32, #tpu.memory_space<vmem>>, vector<2x128xf32>
    tpu.vector_store %arg8[%c0_17, %c0_18], %22 {strides = array<i32>} : memref<2x128xf32, #tpu.memory_space<vmem>>, vector<2x128xf32>,
    return
  }
  func.func @transform_0(%arg0: i32) -> (i32, i32) {
    %c0_i32 = arith.constant 0 : i32
    %c0_i32_0 = arith.constant 0 : i32
    return %arg0, %c0_i32 : i32, i32
  }
  func.func @transform_1(%arg0: i32) -> (i32, i32) {
    %c0_i32 = arith.constant 0 : i32
    %c0_i32_0 = arith.constant 0 : i32
    %c0_i32_1 = arith.constant 0 : i32
    return %c0_i32, %c0_i32_0 : i32, i32
  }
  func.func @transform_2(%arg0: i32) -> (i32, i32) {
    %c0_i32 = arith.constant 0 : i32
    %c0_i32_0 = arith.constant 0 : i32
    %c0_i32_1 = arith.constant 0 : i32
    return %c0_i32, %c0_i32_0 : i32, i32
  }
  func.func @transform_3(%arg0: i32) -> (i32, i32) {
    %c0_i32 = arith.constant 0 : i32
    %c0_i32_0 = arith.constant 0 : i32
    %c0_i32_1 = arith.constant 0 : i32
    return %c0_i32, %c0_i32_0 : i32, i32
  }
  func.func @transform_4(%arg0: i32) -> (i32, i32) {
    %c0_i32 = arith.constant 0 : i32
    %c0_i32_0 = arith.constant 0 : i32
    %c0_i32_1 = arith.constant 0 : i32
    return %c0_i32, %c0_i32_0 : i32, i32
  }
  func.func @transform_5(%arg0: i32) -> (i32, i32) {
    %c0_i32 = arith.constant 0 : i32
    %c0_i32_0 = arith.constant 0 : i32
    %c0_i32_1 = arith.constant 0 : i32
    return %c0_i32, %c0_i32_0 : i32, i32
  }
  func.func @transform_6(%arg0: i32) -> (i32, i32) {
    %c0_i32 = arith.constant 0 : i32
    %c0_i32_0 = arith.constant 0 : i32
    %c0_i32_1 = arith.constant 0 : i32
    return %c0_i32, %c0_i32_0 : i32, i32
  }
  func.func @transform_7(%arg0: i32) -> (i32, i32) {
    %c0_i32 = arith.constant 0 : i32
    %c0_i32_0 = arith.constant 0 : i32
    return %arg0, %c0_i32 : i32, i32
  }
}

module attributes {stable_mosaic.version = 11 : i64} {
  func.func @_fused_mlp_kernel(%arg0: i32, %arg1: memref<2x128xbf16, #tpu.memory_space<vmem>>, %arg2: memref<128x128xbf16, #tpu.memory_space<vmem>>, %arg3: memref<1x128xf32, #tpu.memory_space<vmem>>, %arg4: memref<128x128xbf16, #tpu.memory_space<vmem>>, %arg5: memref<1x128xf32, #tpu.memory_space<vmem>>, %arg6: memref<128x128xbf16, #tpu.memory_space<vmem>>, %arg7: memref<1x128xf32, #tpu.memory_space<vmem>>, %arg8: memref<2x128xf32, #tpu.memory_space<vmem>>) attributes {dimension_semantics = [#tpu.dimension_semantics<parallel>], iteration_bounds = array<i64: 1>, scalar_prefetch = 0 : i64, scratch_operands = 0 : i64, tpu.core_type = #tpu.core_type<tc>, window_params = [{transform_indices = @transform_0, window_bounds = array<i64: 2, 128>}, {pipeline_mode = #tpu.pipeline_mode<synchronous>, transform_indices = @transform_1, window_bounds = array<i64: 128, 128>}, {pipeline_mode = #tpu.pipeline_mode<synchronous>, transform_indices = @transform_2, window_bounds = array<i64: 1, 128>}, {pipeline_mode = #tpu.pipeline_mode<synchronous>, transform_indices = @transform_3, window_bounds = array<i64: 128, 128>}, {pipeline_mode = #tpu.pipeline_mode<synchronous>, transform_indices = @transform_4, window_bounds = array<i64: 1, 128>}, {pipeline_mode = #tpu.pipeline_mode<synchronous>, transform_indices = @transform_5, window_bounds = array<i64: 128, 128>}, {pipeline_mode = #tpu.pipeline_mode<synchronous>, transform_indices = @transform_6, window_bounds = array<i64: 1, 128>}, {transform_indices = @transform_7, window_bounds = array<i64: 2, 128>}]} {
    %c0 = arith.constant 0 : index
    %c0_0 = arith.constant 0 : index
    %0 = vector.load %arg1[%c0, %c0_0] : memref<2x128xbf16, #tpu.memory_space<vmem>>, vector<2x128xbf16>
    %c0_1 = arith.constant 0 : index
    %c0_2 = arith.constant 0 : index
    %1 = vector.load %arg2[%c0_1, %c0_2] : memref<128x128xbf16, #tpu.memory_space<vmem>>, vector<128x128xbf16>
    %cst = arith.constant dense<0.000000e+00> : vector<2x128xf32>
    %2 = tpu.matmul %0, %1, %cst {dimension_numbers = #tpu.dot_dimension_numbers<[1], [0], [0], [1], [0, 0, 1, 1], [], []>} : vector<2x128xbf16>, vector<128x128xbf16>, vector<2x128xf32> -> vector<2x128xf32>
    %c0_3 = arith.constant 0 : index
    %c0_4 = arith.constant 0 : index
    %3 = vector.load %arg3[%c0_3, %c0_4] : memref<1x128xf32, #tpu.memory_space<vmem>>, vector<1x128xf32>
    %4 = vector.broadcast %3 : vector<1x128xf32> to vector<2x128xf32>
    %5 = arith.addf %2, %4 : vector<2x128xf32>
    %cst_5 = arith.constant 0.000000e+00 : f32
    %6 = vector.broadcast %cst_5 : f32 to vector<2x128xf32>
    %7 = arith.maximumf %5, %6 : vector<2x128xf32>
    %8 = arith.truncf %7 : vector<2x128xf32> to vector<2x128xbf16>
    %c0_6 = arith.constant 0 : index
    %c0_7 = arith.constant 0 : index
    %9 = vector.load %arg4[%c0_6, %c0_7] : memref<128x128xbf16, #tpu.memory_space<vmem>>, vector<128x128xbf16>
    %cst_8 = arith.constant dense<0.000000e+00> : vector<2x128xf32>
    %10 = tpu.matmul %8, %9, %cst_8 {dimension_numbers = #tpu.dot_dimension_numbers<[1], [0], [0], [1], [0, 0, 1, 1], [], []>} : vector<2x128xbf16>, vector<128x128xbf16>, vector<2x128xf32> -> vector<2x128xf32>
    %c0_9 = arith.constant 0 : index
    %c0_10 = arith.constant 0 : index
    %11 = vector.load %arg5[%c0_9, %c0_10] : memref<1x128xf32, #tpu.memory_space<vmem>>, vector<1x128xf32>
    %12 = vector.broadcast %11 : vector<1x128xf32> to vector<2x128xf32>
    %13 = arith.addf %10, %12 : vector<2x128xf32>
    %cst_11 = arith.constant 0.000000e+00 : f32
    %14 = vector.broadcast %cst_11 : f32 to vector<2x128xf32>
    %15 = arith.maximumf %13, %14 : vector<2x128xf32>
    %16 = arith.truncf %15 : vector<2x128xf32> to vector<2x128xbf16>
    %c0_12 = arith.constant 0 : index
    %c0_13 = arith.constant 0 : index
    %17 = vector.load %arg6[%c0_12, %c0_13] : memref<128x128xbf16, #tpu.memory_space<vmem>>, vector<128x128xbf16>
    %cst_14 = arith.constant dense<0.000000e+00> : vector<2x128xf32>
    %18 = tpu.matmul %16, %17, %cst_14 {dimension_numbers = #tpu.dot_dimension_numbers<[1], [0], [0], [1], [0, 0, 1, 1], [], []>} : vector<2x128xbf16>, vector<128x128xbf16>, vector<2x128xf32> -> vector<2x128xf32>
    %c0_15 = arith.constant 0 : index
    %c0_16 = arith.constant 0 : index
    %19 = vector.load %arg7[%c0_15, %c0_16] : memref<1x128xf32, #tpu.memory_space<vmem>>, vector<1x128xf32>
    %20 = vector.broadcast %19 : vector<1x128xf32> to vector<2x128xf32>
    %21 = arith.addf %18, %20 : vector<2x128xf32>
    %22 = math.tanh %21 : vector<2x128xf32>
    %c0_17 = arith.constant 0 : index
    %c0_18 = arith.constant 0 : index
    %23 = vector.load %arg8[%c0_17, %c0_18] : memref<2x128xf32, #tpu.memory_space<vmem>>, vector<2x128xf32>
    tpu.vector_store %arg8[%c0_17, %c0_18], %22 {strides = array<i32>} : memref<2x128xf32, #tpu.memory_space<vmem>>, vector<2x128xf32>,
    return
  }
  func.func @transform_0(%arg0: i32) -> (i32, i32) {
    %c0_i32 = arith.constant 0 : i32
    %c0_i32_0 = arith.constant 0 : i32
    return %arg0, %c0_i32 : i32, i32
  }
  func.func @transform_1(%arg0: i32) -> (i32, i32) {
    %c0_i32 = arith.constant 0 : i32
    %c0_i32_0 = arith.constant 0 : i32
    %c0_i32_1 = arith.constant 0 : i32
    return %c0_i32, %c0_i32_0 : i32, i32
  }
  func.func @transform_2(%arg0: i32) -> (i32, i32) {
    %c0_i32 = arith.constant 0 : i32
    %c0_i32_0 = arith.constant 0 : i32
    %c0_i32_1 = arith.constant 0 : i32
    return %c0_i32, %c0_i32_0 : i32, i32
  }
  func.func @transform_3(%arg0: i32) -> (i32, i32) {
    %c0_i32 = arith.constant 0 : i32
    %c0_i32_0 = arith.constant 0 : i32
    %c0_i32_1 = arith.constant 0 : i32
    return %c0_i32, %c0_i32_0 : i32, i32
  }
  func.func @transform_4(%arg0: i32) -> (i32, i32) {
    %c0_i32 = arith.constant 0 : i32
    %c0_i32_0 = arith.constant 0 : i32
    %c0_i32_1 = arith.constant 0 : i32
    return %c0_i32, %c0_i32_0 : i32, i32
  }
  func.func @transform_5(%arg0: i32) -> (i32, i32) {
    %c0_i32 = arith.constant 0 : i32
    %c0_i32_0 = arith.constant 0 : i32
    %c0_i32_1 = arith.constant 0 : i32
    return %c0_i32, %c0_i32_0 : i32, i32
  }
  func.func @transform_6(%arg0: i32) -> (i32, i32) {
    %c0_i32 = arith.constant 0 : i32
    %c0_i32_0 = arith.constant 0 : i32
    %c0_i32_1 = arith.constant 0 : i32
    return %c0_i32, %c0_i32_0 : i32, i32
  }
  func.func @transform_7(%arg0: i32) -> (i32, i32) {
    %c0_i32 = arith.constant 0 : i32
    %c0_i32_0 = arith.constant 0 : i32
    return %arg0, %c0_i32 : i32, i32
  }
}

</mosaic_0001>

<bundles_post_ra>
// kernel: tpu_custom_call.1
= control target key start
LH: loop header
LB: loop body
LE: loop exit
PB: predicated region body
PF: predicated region fallthrough
CT: control target
= control target key end

     0   :  { %12 = vsyncpa [#allocation3], 0  ;;  %s688_s0 = inlined_call_operand.hbm [shape: bf16[2,128], index: 0, kind: input, shape index: {}]   ;;  %s689_s1 = inlined_call_operand.hbm [shape: bf16[128,128], index: 1, kind: input, shape index: {}]   ;;  %s690_s2 = inlined_call_operand.vmem [shape: f32[1,128], index: 2, kind: input, shape index: {}]   ;;  %s691_s3 = inlined_call_operand.hbm [shape: bf16[128,128], index: 3, kind: input, shape index: {}]   ;;  %s692_s4 = inlined_call_operand.vmem [shape: f32[1,128], index: 4, kind: input, shape index: {}]   ;;  %s693_s5 = inlined_call_operand.hbm [shape: bf16[128,128], index: 5, kind: input, shape index: {}]   ;;  %s694_s6 = inlined_call_operand.vmem [shape: f32[1,128], index: 6, kind: input, shape index: {}]   ;;  %s695_s7 = inlined_call_operand.hbm [shape: f32[2,128], index: 7, kind: output, shape index: {}]  }
   0x1   :  { %13 = vsyncpa [#allocation6], 0 }
   0x2   :  { %14 = vsyncpa [#allocation9], 0  ;;  %s31_s26 = sshll.u32 %s689_s1, 4  ;;  %s32_s26 = int_to_ptr.hbm [resolvable:$true] %s31_s26 }
   0x3   :  { %15 = vsyncpa [#allocation4], 0  ;;  %s617_s27 = smov [#allocation5]   ;;  %s21_s8 = sshll.u32 %s688_s0, 4  ;;  %s22_s8 = int_to_ptr.hbm [resolvable:$true] %s21_s8 }
   0x4   :  { %s33_s28 = sshll.u32 %s617_s27, 4  ;;  %s618_s9 = smov 64   ;;  %s34_s28 = int_to_ptr.vmem [resolvable:$true] %s33_s28 }
   0x5   :  { %s619_s10 = smov 4   ;;  %s620_s11 = smov [#allocation2]  }
   0x6   :  { %39 = dma.hbm_to_vmem [thread:$0]  %s32_s26, 1024, %s34_s28, [#allocation6], %s618_s9, %s618_s9, %s619_s10  }
   0x7   :  { %s23_s12 = sshll.u32 %s620_s11, 4  ;;  %s46_s15 = sshll.u32 %s691_s3, 4  ;;  %s24_s12 = int_to_ptr.vmem [resolvable:$true] %s23_s12  ;;  %s47_s15 = int_to_ptr.hbm [resolvable:$true] %s46_s15 }
   0x8   :  { %26 = dma.hbm_to_vmem [thread:$0]  %s22_s8, 16, %s24_s12, [#allocation3]  }
   0x9   :  { %s61_s17 = sshll.u32 %s693_s5, 4  ;;  %s621_s18 = smov [#allocation7]   ;;  %s62_s17 = int_to_ptr.hbm [resolvable:$true] %s61_s17 }
   0xa   :  { %s48_s19 = sshll.u32 %s621_s18, 4  ;;  %s622_s0 = smov [#allocation8]   ;;  %s49_s19 = int_to_ptr.vmem [resolvable:$true] %s48_s19 }
   0xb   :  { %54 = dma.hbm_to_vmem [thread:$0]  %s47_s15, 1024, %s49_s19, [#allocation6], %s618_s9, %s618_s9, %s619_s10  }
   0xc   :  { %s63_s20 = sshll.u32 %s622_s0, 4  ;;  %s64_s20 = int_to_ptr.vmem [resolvable:$true] %s63_s20 }
   0xd   :  { %69 = dma.hbm_to_vmem [thread:$0]  %s62_s17, 1024, %s64_s20, [#allocation9], %s618_s9, %s618_s9, %s619_s10  }
   0xe   :  { %609 = dma.done.wait [#allocation3], 16  }
   0xf   :  { %610 = vsyncadd [#allocation3], 4294967280 }
  0x10   :  { %611 = dma.done.wait [#allocation6], 2048  }
  0x11   :  { %612 = vsyncadd [#allocation6], 4294965248 }
  0x12   :  { %613 = dma.done.wait [#allocation9], 1024  }
  0x13   :  { %614 = vsyncadd [#allocation9], 4294966272  ;;  %v460_v0 = vld [vmem:[#allocation5 + $0x38] sm:$0xff]  ;;  %v459_v1 = vld [vmem:[#allocation5 + $0x30] sm:$0xff]  ;;  %s623_s24 = smov [#allocation10]   ;;  %s345_s28 = sshll.u32 %s695_s7, 4  ;;  %s346_s28 = int_to_ptr.hbm [resolvable:$true] %s345_s28 }
  0x14   :  { %157 = vmatpush.bf16.msra.mxu0 %v460_v0  ;;  %v468_v2 = vld [vmem:[#allocation7 + $0x38] sm:$0xff]  ;;  %v467_v3 = vld [vmem:[#allocation7 + $0x30] sm:$0xff]  ;;  %v458_v4 = vld [vmem:[#allocation5 + $0x28] sm:$0xff]  ;;  %s343_s25 = sshll.u32 %s623_s24, 4  ;;  %s344_s25 = int_to_ptr.vmem [resolvable:$true] %s343_s25 }
  0x15   :  { %240 = vmatpush.bf16.msra.mxu1 %v468_v2  ;;  %v466_v5 = vld [vmem:[#allocation7 + $0x28] sm:$0xff]  ;;  %v457_v6 = vld [vmem:[#allocation5 + $0x20] sm:$0xff]  ;;  %v456_v8 = vld [vmem:[#allocation5 + $0x18] sm:$0xff] }
  0x16   :  { %v465_v7 = vld [vmem:[#allocation7 + $0x20] sm:$0xff]  ;;  %v464_v9 = vld [vmem:[#allocation7 + $0x18] sm:$0xff]  ;;  %v455_v10 = vld [vmem:[#allocation5 + $0x10] sm:$0xff] }
  0x17   :  { %v463_v11 = vld [vmem:[#allocation7 + $0x10] sm:$0xff]  ;;  %v454_v12 = vld [vmem:[#allocation5 + $0x8] sm:$0xff]  ;;  %v453_v13 = vld [vmem:[#allocation5] sm:$0xff] }
  0x18   :  { %158 = vmatpush.bf16.msra.mxu0 %v459_v1  ;;  %v88_v14 = vld [vmem:[#allocation2] sm:$0x1]  ;;  %v462_v15 = vld [vmem:[#allocation7 + $0x8] sm:$0xff]  ;;  %v461_v16 = vld [vmem:[#allocation7] sm:$0xff] }
  0x19   :  { %241 = vmatpush.bf16.msra.mxu1 %v467_v3  ;;  %v476_v17 = vld [vmem:[#allocation8 + $0x38] sm:$0xff]  ;;  %v475_v18 = vld [vmem:[#allocation8 + $0x30] sm:$0xff]  ;;  %v474_v19 = vld [vmem:[#allocation8 + $0x28] sm:$0xff] }
  0x1a   :  { %323 = vmatpush.bf16.msra.mxu2 %v476_v17  ;;  %v473_v20 = vld [vmem:[#allocation8 + $0x20] sm:$0xff]  ;;  %v472_v21 = vld [vmem:[#allocation8 + $0x18] sm:$0xff]  ;;  %v471_v22 = vld [vmem:[#allocation8 + $0x10] sm:$0xff] }
  0x1b   :  { %v484_v23 = vld [vmem:[%s690_s2] ss:$0 sm:$0xff]  ;;  %v470_v29 = vld [vmem:[#allocation8 + $0x8] sm:$0xff]  ;;  %v469_v30 = vld [vmem:[#allocation8] sm:$0xff] }
  0x1c   :  { %159 = vmatpush.bf16.msra.mxu0 %v458_v4  ;;  %v485_v31 = vld [vmem:[%s692_s4] ss:$0 sm:$0xff] }
  0x1d   :  { %242 = vmatpush.bf16.msra.mxu1 %v466_v5  ;;  %v486_v37 = vld [vmem:[%s694_s6] ss:$0 sm:$0xff] }
  0x1e   :  { %324 = vmatpush.bf16.msra.mxu2 %v475_v18 }
  0x20   :  { %160 = vmatpush.bf16.msra.mxu0 %v457_v6 }
  0x21   :  { %243 = vmatpush.bf16.msra.mxu1 %v465_v7 }
  0x22   :  { %325 = vmatpush.bf16.msra.mxu2 %v474_v19 }
  0x24   :  { %161 = vmatpush.bf16.msra.mxu0 %v456_v8 }
  0x25   :  { %244 = vmatpush.bf16.msra.mxu1 %v464_v9 }
  0x26   :  { %326 = vmatpush.bf16.msra.mxu2 %v473_v20 }
  0x28   :  { %162 = vmatpush.bf16.msra.mxu0 %v455_v10 }
  0x29   :  { %245 = vmatpush.bf16.msra.mxu1 %v463_v11 }
  0x2a   :  { %327 = vmatpush.bf16.msra.mxu2 %v472_v21 }
  0x2c   :  { %163 = vmatpush.bf16.msra.mxu0 %v454_v12 }
  0x2d   :  { %246 = vmatpush.bf16.msra.mxu1 %v462_v15 }
  0x2e   :  { %328 = vmatpush.bf16.msra.mxu2 %v471_v22 }
  0x30   :  { %164 = vmatpush.bf16.msra.mxu0 %v453_v13 }
  0x31   :  { %247 = vmatpush.bf16.msra.mxu1 %v461_v16 }
  0x32   :  { %329 = vmatpush.bf16.msra.mxu2 %v470_v29 }
  0x33   :  { %165 = vmatmul.bf16.vlgmr.msra.gmra.mxu0 %v88_v14 }
  0x36   :  { %330 = vmatpush.bf16.msra.mxu2 %v469_v30 }
  0xb0   :  { %v166_v24 = vpop.f32.mrf.mxu0 }
  0xb1   :  { %v167_v25 = vadd.f32 %v484_v23, %v166_v24 }
  0xb3   :  { %v170_v26 = vmax.f32 %v167_v25, 0.0 }
  0xb5   :  { %v171_v27 = vpack.c.bf16 %v170_v26, %v170_v26 }
  0xb7   :  { %248 = vmatmul.bf16.vlgmr.msra.gmra.mxu1 %v171_v27 }
  0xb8   :  { %v168_v28 = vpop.f32.mrf.mxu0 }
 0x134   :  { %v249_v32 = vpop.f32.mrf.mxu1 }
 0x135   :  { %v250_v33 = vadd.f32 %v485_v31, %v249_v32 }
 0x137   :  { %v253_v34 = vmax.f32 %v250_v33, 0.0 }
 0x139   :  { %v254_v35 = vpack.c.bf16 %v253_v34, %v253_v34 }
 0x13b   :  { %331 = vmatmul.bf16.vlgmr.msra.gmra.mxu2 %v254_v35 }
 0x13c   :  { %v251_v36 = vpop.f32.mrf.mxu1 }
 0x1be   :  { %v332_v38 = vpop.f32.mrf.mxu2 }
 0x1bf   :  { %v333_v39 = vadd.f32 %v486_v37, %v332_v38 }
 0x1c1   :  { %487 = vtanh.f32 %v333_v39 }
 0x1c6   :  { %v334_v40 = vpop.f32.mrf.mxu2 }
 0x1c7   :  { %v488_v41 = vpop.eup %487 }
 0x1c8   :  { %337 = vst [vmem:[#allocation10] sm:$0x3] %v488_v41 }
 0x1c9   :  { %348 = dma.vmem_to_hbm [thread:$0]  %s344_s25, 32, %s346_s28, [#allocation4]  }
 0x1ca   :  { %615 = dma.done.wait [#allocation4], 32  }
 0x1cb   :  { %616 = vsyncadd [#allocation4], 4294967264 }
 0x1cc   :  { %353 = vsyncpa [#allocation3], 1 }
 0x1cd   :  { %354 = vsyncpa [#allocation6], 1 }
 0x1ce   :  { %355 = vsyncpa [#allocation9], 1 }
 0x1cf   :  { %356 = vsyncpa [#allocation4], 1 }

// kernel: tpu_custom_call.1
= control target key start
LH: loop header
LB: loop body
LE: loop exit
PB: predicated region body
PF: predicated region fallthrough
CT: control target
= control target key end

     0   :  { %12 = vsyncpa [#allocation3], 0  ;;  %s688_s0 = inlined_call_operand.hbm [shape: bf16[2,128], index: 0, kind: input, shape index: {}]   ;;  %s689_s1 = inlined_call_operand.hbm [shape: bf16[128,128], index: 1, kind: input, shape index: {}]   ;;  %s690_s2 = inlined_call_operand.vmem [shape: f32[1,128], index: 2, kind: input, shape index: {}]   ;;  %s691_s3 = inlined_call_operand.hbm [shape: bf16[128,128], index: 3, kind: input, shape index: {}]   ;;  %s692_s4 = inlined_call_operand.vmem [shape: f32[1,128], index: 4, kind: input, shape index: {}]   ;;  %s693_s5 = inlined_call_operand.hbm [shape: bf16[128,128], index: 5, kind: input, shape index: {}]   ;;  %s694_s6 = inlined_call_operand.vmem [shape: f32[1,128], index: 6, kind: input, shape index: {}]   ;;  %s695_s7 = inlined_call_operand.hbm [shape: f32[2,128], index: 7, kind: output, shape index: {}]  }
   0x1   :  { %13 = vsyncpa [#allocation6], 0 }
   0x2   :  { %14 = vsyncpa [#allocation9], 0  ;;  %s31_s26 = sshll.u32 %s689_s1, 4  ;;  %s32_s26 = int_to_ptr.hbm [resolvable:$true] %s31_s26 }
   0x3   :  { %15 = vsyncpa [#allocation4], 0  ;;  %s617_s27 = smov [#allocation5]   ;;  %s21_s8 = sshll.u32 %s688_s0, 4  ;;  %s22_s8 = int_to_ptr.hbm [resolvable:$true] %s21_s8 }
   0x4   :  { %s33_s28 = sshll.u32 %s617_s27, 4  ;;  %s618_s9 = smov 64   ;;  %s34_s28 = int_to_ptr.vmem [resolvable:$true] %s33_s28 }
   0x5   :  { %s619_s10 = smov 4   ;;  %s620_s11 = smov [#allocation2]  }
   0x6   :  { %39 = dma.hbm_to_vmem [thread:$0]  %s32_s26, 1024, %s34_s28, [#allocation6], %s618_s9, %s618_s9, %s619_s10  }
   0x7   :  { %s23_s12 = sshll.u32 %s620_s11, 4  ;;  %s46_s15 = sshll.u32 %s691_s3, 4  ;;  %s24_s12 = int_to_ptr.vmem [resolvable:$true] %s23_s12  ;;  %s47_s15 = int_to_ptr.hbm [resolvable:$true] %s46_s15 }
   0x8   :  { %26 = dma.hbm_to_vmem [thread:$0]  %s22_s8, 16, %s24_s12, [#allocation3]  }
   0x9   :  { %s61_s17 = sshll.u32 %s693_s5, 4  ;;  %s621_s18 = smov [#allocation7]   ;;  %s62_s17 = int_to_ptr.hbm [resolvable:$true] %s61_s17 }
   0xa   :  { %s48_s19 = sshll.u32 %s621_s18, 4  ;;  %s622_s0 = smov [#allocation8]   ;;  %s49_s19 = int_to_ptr.vmem [resolvable:$true] %s48_s19 }
   0xb   :  { %54 = dma.hbm_to_vmem [thread:$0]  %s47_s15, 1024, %s49_s19, [#allocation6], %s618_s9, %s618_s9, %s619_s10  }
   0xc   :  { %s63_s20 = sshll.u32 %s622_s0, 4  ;;  %s64_s20 = int_to_ptr.vmem [resolvable:$true] %s63_s20 }
   0xd   :  { %69 = dma.hbm_to_vmem [thread:$0]  %s62_s17, 1024, %s64_s20, [#allocation9], %s618_s9, %s618_s9, %s619_s10  }
   0xe   :  { %609 = dma.done.wait [#allocation3], 16  }
   0xf   :  { %610 = vsyncadd [#allocation3], 4294967280 }
  0x10   :  { %611 = dma.done.wait [#allocation6], 2048  }
  0x11   :  { %612 = vsyncadd [#allocation6], 4294965248 }
  0x12   :  { %613 = dma.done.wait [#allocation9], 1024  }
  0x13   :  { %614 = vsyncadd [#allocation9], 4294966272  ;;  %v460_v0 = vld [vmem:[#allocation5 + $0x38] sm:$0xff]  ;;  %v459_v1 = vld [vmem:[#allocation5 + $0x30] sm:$0xff]  ;;  %s623_s24 = smov [#allocation10]   ;;  %s345_s28 = sshll.u32 %s695_s7, 4  ;;  %s346_s28 = int_to_ptr.hbm [resolvable:$true] %s345_s28 }
  0x14   :  { %157 = vmatpush.bf16.msra.mxu0 %v460_v0  ;;  %v468_v2 = vld [vmem:[#allocation7 + $0x38] sm:$0xff]  ;;  %v467_v3 = vld [vmem:[#allocation7 + $0x30] sm:$0xff]  ;;  %v458_v4 = vld [vmem:[#allocation5 + $0x28] sm:$0xff]  ;;  %s343_s25 = sshll.u32 %s623_s24, 4  ;;  %s344_s25 = int_to_ptr.vmem [resolvable:$true] %s343_s25 }
  0x15   :  { %240 = vmatpush.bf16.msra.mxu1 %v468_v2  ;;  %v466_v5 = vld [vmem:[#allocation7 + $0x28] sm:$0xff]  ;;  %v457_v6 = vld [vmem:[#allocation5 + $0x20] sm:$0xff]  ;;  %v456_v8 = vld [vmem:[#allocation5 + $0x18] sm:$0xff] }
  0x16   :  { %v465_v7 = vld [vmem:[#allocation7 + $0x20] sm:$0xff]  ;;  %v464_v9 = vld [vmem:[#allocation7 + $0x18] sm:$0xff]  ;;  %v455_v10 = vld [vmem:[#allocation5 + $0x10] sm:$0xff] }
  0x17   :  { %v463_v11 = vld [vmem:[#allocation7 + $0x10] sm:$0xff]  ;;  %v454_v12 = vld [vmem:[#allocation5 + $0x8] sm:$0xff]  ;;  %v453_v13 = vld [vmem:[#allocation5] sm:$0xff] }
  0x18   :  { %158 = vmatpush.bf16.msra.mxu0 %v459_v1  ;;  %v88_v14 = vld [vmem:[#allocation2] sm:$0x1]  ;;  %v462_v15 = vld [vmem:[#allocation7 + $0x8] sm:$0xff]  ;;  %v461_v16 = vld [vmem:[#allocation7] sm:$0xff] }
  0x19   :  { %241 = vmatpush.bf16.msra.mxu1 %v467_v3  ;;  %v476_v17 = vld [vmem:[#allocation8 + $0x38] sm:$0xff]  ;;  %v475_v18 = vld [vmem:[#allocation8 + $0x30] sm:$0xff]  ;;  %v474_v19 = vld [vmem:[#allocation8 + $0x28] sm:$0xff] }
  0x1a   :  { %323 = vmatpush.bf16.msra.mxu2 %v476_v17  ;;  %v473_v20 = vld [vmem:[#allocation8 + $0x20] sm:$0xff]  ;;  %v472_v21 = vld [vmem:[#allocation8 + $0x18] sm:$0xff]  ;;  %v471_v22 = vld [vmem:[#allocation8 + $0x10] sm:$0xff] }
  0x1b   :  { %v484_v23 = vld [vmem:[%s690_s2] ss:$0 sm:$0xff]  ;;  %v470_v29 = vld [vmem:[#allocation8 + $0x8] sm:$0xff]  ;;  %v469_v30 = vld [vmem:[#allocation8] sm:$0xff] }
  0x1c   :  { %159 = vmatpush.bf16.msra.mxu0 %v458_v4  ;;  %v485_v31 = vld [vmem:[%s692_s4] ss:$0 sm:$0xff] }
  0x1d   :  { %242 = vmatpush.bf16.msra.mxu1 %v466_v5  ;;  %v486_v37 = vld [vmem:[%s694_s6] ss:$0 sm:$0xff] }
  0x1e   :  { %324 = vmatpush.bf16.msra.mxu2 %v475_v18 }
  0x20   :  { %160 = vmatpush.bf16.msra.mxu0 %v457_v6 }
  0x21   :  { %243 = vmatpush.bf16.msra.mxu1 %v465_v7 }
  0x22   :  { %325 = vmatpush.bf16.msra.mxu2 %v474_v19 }
  0x24   :  { %161 = vmatpush.bf16.msra.mxu0 %v456_v8 }
  0x25   :  { %244 = vmatpush.bf16.msra.mxu1 %v464_v9 }
  0x26   :  { %326 = vmatpush.bf16.msra.mxu2 %v473_v20 }
  0x28   :  { %162 = vmatpush.bf16.msra.mxu0 %v455_v10 }
  0x29   :  { %245 = vmatpush.bf16.msra.mxu1 %v463_v11 }
  0x2a   :  { %327 = vmatpush.bf16.msra.mxu2 %v472_v21 }
  0x2c   :  { %163 = vmatpush.bf16.msra.mxu0 %v454_v12 }
  0x2d   :  { %246 = vmatpush.bf16.msra.mxu1 %v462_v15 }
  0x2e   :  { %328 = vmatpush.bf16.msra.mxu2 %v471_v22 }
  0x30   :  { %164 = vmatpush.bf16.msra.mxu0 %v453_v13 }
  0x31   :  { %247 = vmatpush.bf16.msra.mxu1 %v461_v16 }
  0x32   :  { %329 = vmatpush.bf16.msra.mxu2 %v470_v29 }
  0x33   :  { %165 = vmatmul.bf16.vlgmr.msra.gmra.mxu0 %v88_v14 }
  0x36   :  { %330 = vmatpush.bf16.msra.mxu2 %v469_v30 }
  0xb0   :  { %v166_v24 = vpop.f32.mrf.mxu0 }
  0xb1   :  { %v167_v25 = vadd.f32 %v484_v23, %v166_v24 }
  0xb3   :  { %v170_v26 = vmax.f32 %v167_v25, 0.0 }
  0xb5   :  { %v171_v27 = vpack.c.bf16 %v170_v26, %v170_v26 }
  0xb7   :  { %248 = vmatmul.bf16.vlgmr.msra.gmra.mxu1 %v171_v27 }
  0xb8   :  { %v168_v28 = vpop.f32.mrf.mxu0 }
 0x134   :  { %v249_v32 = vpop.f32.mrf.mxu1 }
 0x135   :  { %v250_v33 = vadd.f32 %v485_v31, %v249_v32 }
 0x137   :  { %v253_v34 = vmax.f32 %v250_v33, 0.0 }
 0x139   :  { %v254_v35 = vpack.c.bf16 %v253_v34, %v253_v34 }
 0x13b   :  { %331 = vmatmul.bf16.vlgmr.msra.gmra.mxu2 %v254_v35 }
 0x13c   :  { %v251_v36 = vpop.f32.mrf.mxu1 }
 0x1be   :  { %v332_v38 = vpop.f32.mrf.mxu2 }
 0x1bf   :  { %v333_v39 = vadd.f32 %v486_v37, %v332_v38 }
 0x1c1   :  { %487 = vtanh.f32 %v333_v39 }
 0x1c6   :  { %v334_v40 = vpop.f32.mrf.mxu2 }
 0x1c7   :  { %v488_v41 = vpop.eup %487 }
 0x1c8   :  { %337 = vst [vmem:[#allocation10] sm:$0x3] %v488_v41 }
 0x1c9   :  { %348 = dma.vmem_to_hbm [thread:$0]  %s344_s25, 32, %s346_s28, [#allocation4]  }
 0x1ca   :  { %615 = dma.done.wait [#allocation4], 32  }
 0x1cb   :  { %616 = vsyncadd [#allocation4], 4294967264 }
 0x1cc   :  { %353 = vsyncpa [#allocation3], 1 }
 0x1cd   :  { %354 = vsyncpa [#allocation6], 1 }
 0x1ce   :  { %355 = vsyncpa [#allocation9], 1 }
 0x1cf   :  { %356 = vsyncpa [#allocation4], 1 }

</bundles_post_ra>
